<compile_context>
chip_gen: v7x
topology: tpu7x:2x2x1
jax: 0.10.0
libtpu: 0.0.40
codegen_flags: <defaults>
</compile_context>

<pallas_src>
import functools

import jax
import jax.numpy as jnp
import numpy as np
from jax.experimental import pallas as pl
from jax.experimental.pallas import tpu as pltpu

# Channel indices hard-coded in the PyTorch MixLoss.forward
_ISEL = (8, 9, 10, 15, 16, 17, 20, 24, 26, 27)


def _mix_loss_kernel(x_ref, t_ref, sums_ref, fs_ref,
                     acc_tp, acc_t, acc_p, acc_bce, acc_fs, *, eps, beta2):
    n_s = pl.num_programs(1)
    step = pl.program_id(0) * n_s + pl.program_id(1)
    last = pl.num_programs(0) * n_s - 1

    @pl.when(step == 0)
    def _():
        acc_tp[...] = jnp.zeros_like(acc_tp)
        acc_t[...] = jnp.zeros_like(acc_t)
        acc_p[...] = jnp.zeros_like(acc_p)
        acc_bce[...] = jnp.zeros_like(acc_bce)
        acc_fs[...] = jnp.zeros_like(acc_fs)

    x = x_ref[0].astype(jnp.float32)   # (C, TS)
    t = t_ref[0].astype(jnp.float32)   # (C, TS)

    # One exp + one log per element, shared between sigmoid and BCE.
    e = jnp.exp(-jnp.abs(x))                        # exp(-|x|)
    p = jnp.where(x >= 0.0, 1.0, e) / (1.0 + e)     # numerically stable sigmoid
    bce = jnp.maximum(x, 0.0) - x * t + jnp.log1p(e)
    tp = t * p

    # Vector accumulators (VPU adds only; no per-step cross-lane work).
    acc_tp[...] += tp
    acc_t[...] += t
    acc_p[...] += p
    acc_bce[...] += bce

    # F1 term: channel (sublane) sums are exact because the block covers the
    # full channel extent for this (sample, spatial-tile).
    sp = jnp.sum(p, axis=0, keepdims=True)     # (1, TS)
    st = jnp.sum(t, axis=0, keepdims=True)     # (1, TS)
    stp = jnp.sum(tp, axis=0, keepdims=True)   # (1, TS)
    precise = stp / (sp + eps)
    recall = stp / (st + eps)
    fs = (1.0 + beta2) * precise * recall / (beta2 * precise + recall + eps)
    acc_fs[...] += fs

    # Single cross-lane reduction + tiny stores, once per kernel.
    @pl.when(step == last)
    def _():
        sums_ref[:, 0:1] = jnp.sum(acc_tp[...], axis=1, keepdims=True)
        sums_ref[:, 1:2] = jnp.sum(acc_t[...], axis=1, keepdims=True)
        sums_ref[:, 2:3] = jnp.sum(acc_p[...], axis=1, keepdims=True)
        sums_ref[:, 3:4] = jnp.sum(acc_bce[...], axis=1, keepdims=True)
        fs_ref[0, 0] = jnp.sum(acc_fs[...])


def _pick_spatial_tile(S, C, target_bytes=2 << 20):
    """Largest lane-aligned (multiple of 128) divisor of S with C*TS*4 <= target."""
    max_ts = max(128, target_bytes // (C * 4))
    best = 0
    ts = 128
    while ts <= min(S, max_ts):
        if S % ts == 0:
            best = ts
        ts += 128
    if best == 0:
        # No lane-aligned divisor (e.g. S < 128 or S not a multiple of 128):
        # use the full spatial extent as a single block (equal-to-dim is legal).
        best = S
    return best


def mix_loss(y_pred, y_true, alpha=1.0, gamma=1.0):
    """Pallas implementation of MixLoss.forward (returns a scalar)."""
    if y_pred.shape != y_true.shape:
        raise ValueError(
            f"y_true shape {y_true.shape} must match y_pred shape {y_pred.shape}")
    if y_pred.ndim < 2:
        raise ValueError("MixLoss expects at least a (N, C, ...) input")
    N, C = int(y_pred.shape[0]), int(y_pred.shape[1])
    if C <= max(_ISEL):
        raise ValueError(f"MixLoss selects channel {max(_ISEL)}; need C >= {max(_ISEL) + 1}")
    S = int(np.prod(y_pred.shape[2:])) if y_pred.ndim > 2 else 1

    x3 = y_pred.reshape(N, C, S)
    t3 = y_true.reshape(N, C, S)

    TS = _pick_spatial_tile(S, C)
    grid = (N, S // TS)

    total = N * C * S
    cost = pl.CostEstimate(
        flops=20 * total,
        transcendentals=2 * total,
        bytes_accessed=2 * total * x3.dtype.itemsize + (4 * C + 1) * 4,
    )

    kernel = functools.partial(_mix_loss_kernel, eps=1e-6, beta2=4.0)

    sums, fs_sum = pl.pallas_call(
        kernel,
        out_shape=(
            jax.ShapeDtypeStruct((C, 4), jnp.float32),   # per-channel tp, t, p, bce sums
            jax.ShapeDtypeStruct((1, 1), jnp.float32),   # sum of F1 scores
        ),
        grid_spec=pltpu.PrefetchScalarGridSpec(
            num_scalar_prefetch=0,
            grid=grid,
            in_specs=[
                pl.BlockSpec((1, C, TS), lambda n, s: (n, 0, s)),
                pl.BlockSpec((1, C, TS), lambda n, s: (n, 0, s)),
            ],
            out_specs=(
                pl.BlockSpec((C, 4), lambda n, s: (0, 0)),
                pl.BlockSpec((1, 1), lambda n, s: (0, 0), memory_space=pltpu.SMEM),
            ),
            scratch_shapes=[
                pltpu.VMEM((C, TS), jnp.float32),   # acc_tp
                pltpu.VMEM((C, TS), jnp.float32),   # acc_t
                pltpu.VMEM((C, TS), jnp.float32),   # acc_p
                pltpu.VMEM((C, TS), jnp.float32),   # acc_bce
                pltpu.VMEM((1, TS), jnp.float32),   # acc_fs
            ],
        ),
        compiler_params=pltpu.CompilerParams(
            dimension_semantics=("arbitrary", "arbitrary"),
        ),
        cost_estimate=cost,
    )(x3, t3)

    tp_c = sums[:, 0]
    t_c = sums[:, 1]
    p_c = sums[:, 2]
    bce_c = sums[:, 3]

    # BCEWithLogitsLoss(size_average=True): mean over every element.
    loss_m = jnp.sum(bce_c) / jnp.float32(total)

    # DiceLoss: global + 10 selected channels, divided by (len(isel) - 1).
    smooth = jnp.float32(1.0)

    def dice(tp_s, t_s, p_s):
        return 1.0 - (2.0 * tp_s + smooth) / (t_s + p_s + smooth)

    isel = np.asarray(_ISEL)
    loss_d = dice(jnp.sum(tp_c), jnp.sum(t_c), jnp.sum(p_c))
    loss_d = loss_d + jnp.sum(dice(tp_c[isel], t_c[isel], p_c[isel]))
    loss_d = loss_d / jnp.float32(len(_ISEL) - 1)

    # F1Loss: 1 - sum(fs) / batch_size.
    loss_f = 1.0 - fs_sum[0, 0] / jnp.float32(N)

    return (alpha * loss_m + gamma * loss_d + loss_f).astype(jnp.float32)


def _mix_loss_ref(y_pred, y_true, alpha=1.0, gamma=1.0):
    """Pure-JAX reference mirroring the PyTorch MixLoss.forward."""
    x = y_pred.astype(jnp.float32)
    t = y_true.astype(jnp.float32)

    # BCEWithLogitsLoss (mean)
    bce = jnp.maximum(x, 0.0) - x * t + jnp.log1p(jnp.exp(-jnp.abs(x)))
    loss_m = jnp.mean(bce)

    p = jax.nn.sigmoid(x)
    smooth = 1.0

    def dice(pp, tt):
        return 1.0 - (2.0 * jnp.sum(tt * pp) + smooth) / (
            jnp.sum(tt) + jnp.sum(pp) + smooth)

    loss_d = dice(p, t)
    for i in _ISEL:
        loss_d = loss_d + dice(p[:, i], t[:, i])
    loss_d = loss_d / (len(_ISEL) - 1)

    eps = 1e-6
    beta = 2.0
    num_pos = jnp.sum(p, axis=1) + eps
    num_pos_hat = jnp.sum(t, axis=1) + eps
    tp = jnp.sum(t * p, axis=1)
    precise = tp / num_pos
    recall = tp / num_pos_hat
    fs = (1.0 + beta * beta) * precise * recall / (beta * beta * precise + recall + eps)
    loss_f = 1.0 - fs.sum() / x.shape[0]

    return alpha * loss_m + gamma * loss_d + loss_f


if __name__ == "__main__":
    key = jax.random.PRNGKey(0)
    k1, k2 = jax.random.split(key)

    # MixLoss hard-codes channel indices up to 27, so C must be >= 28.
    N, C, H, W = 2, 32, 16, 16
    y_pred = jax.random.normal(k1, (N, C, H, W), dtype=jnp.float32)
    y_true = (jax.random.uniform(k2, (N, C, H, W)) > 0.5).astype(jnp.float32)

    out = mix_loss(y_pred, y_true, alpha=1.0, gamma=1.0)
    out = jax.block_until_ready(out)

    ref = _mix_loss_ref(y_pred, y_true, alpha=1.0, gamma=1.0)
    np.testing.assert_allclose(np.asarray(out), np.asarray(ref), rtol=1e-4, atol=1e-4)

    print("KERNEL_OK")
</pallas_src>

<mosaic_0001>
module attributes {stable_mosaic.version = 11 : i64} {
  func.func @_mix_loss_kernel(%arg0: i32, %arg1: i32, %arg2: memref<1x32x256xf32, #tpu.memory_space<vmem>>, %arg3: memref<1x32x256xf32, #tpu.memory_space<vmem>>, %arg4: memref<32x4xf32, #tpu.memory_space<vmem>>, %arg5: memref<1x1xf32, #tpu.memory_space<smem>>, %arg6: memref<32x256xf32, #tpu.memory_space<vmem>>, %arg7: memref<32x256xf32, #tpu.memory_space<vmem>>, %arg8: memref<32x256xf32, #tpu.memory_space<vmem>>, %arg9: memref<32x256xf32, #tpu.memory_space<vmem>>, %arg10: memref<1x256xf32, #tpu.memory_space<vmem>>) attributes {dimension_semantics = [#tpu.dimension_semantics<arbitrary>, #tpu.dimension_semantics<arbitrary>], iteration_bounds = array<i64: 2, 1>, scalar_prefetch = 0 : i64, scratch_operands = 5 : i64, tpu.core_type = #tpu.core_type<tc>, window_params = [{transform_indices = @transform_0, window_bounds = array<i64: 1, 32, 256>}, {transform_indices = @transform_1, window_bounds = array<i64: 1, 32, 256>}, {pipeline_mode = #tpu.pipeline_mode<synchronous>, transform_indices = @transform_2, window_bounds = array<i64: 32, 4>}, {transform_indices = @transform_3, window_bounds = array<i64: 1, 1>}]} {
    %c1_i32 = arith.constant 1 : i32
    %0 = arith.muli %arg0, %c1_i32 : i32
    %1 = arith.addi %0, %arg1 : i32
    %c0_i32 = arith.constant 0 : i32
    %2 = arith.cmpi eq, %1, %c0_i32 : i32
    %3 = arith.extui %2 : i1 to i32
    %c0_i32_0 = arith.constant 0 : i32
    %4 = arith.cmpi ne, %3, %c0_i32_0 : i32
    scf.if %4 {
      %cst_40 = arith.constant 0.000000e+00 : f32
      %66 = vector.broadcast %cst_40 : f32 to vector<32x256xf32>
      %c0_41 = arith.constant 0 : index
      %c0_42 = arith.constant 0 : index
      %67 = vector.load %arg6[%c0_41, %c0_42] : memref<32x256xf32, #tpu.memory_space<vmem>>, vector<32x256xf32>
      tpu.vector_store %arg6[%c0_41, %c0_42], %66 {strides = array<i32>} : memref<32x256xf32, #tpu.memory_space<vmem>>, vector<32x256xf32>,
      %cst_43 = arith.constant 0.000000e+00 : f32
      %68 = vector.broadcast %cst_43 : f32 to vector<32x256xf32>
      %c0_44 = arith.constant 0 : index
      %c0_45 = arith.constant 0 : index
      %69 = vector.load %arg7[%c0_44, %c0_45] : memref<32x256xf32, #tpu.memory_space<vmem>>, vector<32x256xf32>
      tpu.vector_store %arg7[%c0_44, %c0_45], %68 {strides = array<i32>} : memref<32x256xf32, #tpu.memory_space<vmem>>, vector<32x256xf32>,
      %cst_46 = arith.constant 0.000000e+00 : f32
      %70 = vector.broadcast %cst_46 : f32 to vector<32x256xf32>
      %c0_47 = arith.constant 0 : index
      %c0_48 = arith.constant 0 : index
      %71 = vector.load %arg8[%c0_47, %c0_48] : memref<32x256xf32, #tpu.memory_space<vmem>>, vector<32x256xf32>
      tpu.vector_store %arg8[%c0_47, %c0_48], %70 {strides = array<i32>} : memref<32x256xf32, #tpu.memory_space<vmem>>, vector<32x256xf32>,
      %cst_49 = arith.constant 0.000000e+00 : f32
      %72 = vector.broadcast %cst_49 : f32 to vector<32x256xf32>
      %c0_50 = arith.constant 0 : index
      %c0_51 = arith.constant 0 : index
      %73 = vector.load %arg9[%c0_50, %c0_51] : memref<32x256xf32, #tpu.memory_space<vmem>>, vector<32x256xf32>
      tpu.vector_store %arg9[%c0_50, %c0_51], %72 {strides = array<i32>} : memref<32x256xf32, #tpu.memory_space<vmem>>, vector<32x256xf32>,
      %cst_52 = arith.constant 0.000000e+00 : f32
      %74 = vector.broadcast %cst_52 : f32 to vector<1x256xf32>
      %c0_53 = arith.constant 0 : index
      %c0_54 = arith.constant 0 : index
      %75 = vector.load %arg10[%c0_53, %c0_54] : memref<1x256xf32, #tpu.memory_space<vmem>>, vector<1x256xf32>
      tpu.vector_store %arg10[%c0_53, %c0_54], %74 {strides = array<i32>} : memref<1x256xf32, #tpu.memory_space<vmem>>, vector<1x256xf32>,
    } else {
    }
    %c0 = arith.constant 0 : index
    %c0_1 = arith.constant 0 : index
    %c0_2 = arith.constant 0 : index
    %5 = vector.load %arg2[%c0, %c0_1, %c0_2] : memref<1x32x256xf32, #tpu.memory_space<vmem>>, vector<1x32x256xf32>
    %6 = vector.shape_cast %5 : vector<1x32x256xf32> to vector<32x256xf32>
    %c0_3 = arith.constant 0 : index
    %c0_4 = arith.constant 0 : index
    %c0_5 = arith.constant 0 : index
    %7 = vector.load %arg3[%c0_3, %c0_4, %c0_5] : memref<1x32x256xf32, #tpu.memory_space<vmem>>, vector<1x32x256xf32>
    %8 = vector.shape_cast %7 : vector<1x32x256xf32> to vector<32x256xf32>
    %9 = math.absf %6 : vector<32x256xf32>
    %cst = arith.constant 0.000000e+00 : f32
    %10 = vector.broadcast %cst : f32 to vector<32x256xf32>
    %11 = arith.subf %10, %9 : vector<32x256xf32>
    %12 = math.exp %11 : vector<32x256xf32>
    %cst_6 = arith.constant 0.000000e+00 : f32
    %13 = vector.broadcast %cst_6 : f32 to vector<32x256xf32>
    %14 = arith.cmpf oge, %6, %13 : vector<32x256xf32>
    %cst_7 = arith.constant 1.000000e+00 : f32
    %15 = vector.broadcast %cst_7 : f32 to vector<32x256xf32>
    %16 = arith.select %14, %15, %12 : vector<32x256xi1>, vector<32x256xf32>
    %cst_8 = arith.constant 1.000000e+00 : f32
    %17 = vector.broadcast %cst_8 : f32 to vector<32x256xf32>
    %18 = arith.addf %17, %12 : vector<32x256xf32>
    %19 = arith.divf %16, %18 : vector<32x256xf32>
    %cst_9 = arith.constant 0.000000e+00 : f32
    %20 = vector.broadcast %cst_9 : f32 to vector<32x256xf32>
    %21 = arith.maximumf %6, %20 : vector<32x256xf32>
    %22 = arith.mulf %6, %8 : vector<32x256xf32>
    %23 = arith.subf %21, %22 : vector<32x256xf32>
    %24 = math.log1p %12 : vector<32x256xf32>
    %25 = arith.addf %23, %24 : vector<32x256xf32>
    %26 = arith.mulf %8, %19 : vector<32x256xf32>
    %c0_10 = arith.constant 0 : index
    %c0_11 = arith.constant 0 : index
    %27 = vector.load %arg6[%c0_10, %c0_11] : memref<32x256xf32, #tpu.memory_space<vmem>>, vector<32x256xf32>
    %28 = arith.addf %27, %26 : vector<32x256xf32>
    %c0_12 = arith.constant 0 : index
    %c0_13 = arith.constant 0 : index
    %29 = vector.load %arg6[%c0_12, %c0_13] : memref<32x256xf32, #tpu.memory_space<vmem>>, vector<32x256xf32>
    tpu.vector_store %arg6[%c0_12, %c0_13], %28 {strides = array<i32>} : memref<32x256xf32, #tpu.memory_space<vmem>>, vector<32x256xf32>,
    %c0_14 = arith.constant 0 : index
    %c0_15 = arith.constant 0 : index
    %30 = vector.load %arg7[%c0_14, %c0_15] : memref<32x256xf32, #tpu.memory_space<vmem>>, vector<32x256xf32>
    %31 = arith.addf %30, %8 : vector<32x256xf32>
    %c0_16 = arith.constant 0 : index
    %c0_17 = arith.constant 0 : index
    %32 = vector.load %arg7[%c0_16, %c0_17] : memref<32x256xf32, #tpu.memory_space<vmem>>, vector<32x256xf32>
    tpu.vector_store %arg7[%c0_16, %c0_17], %31 {strides = array<i32>} : memref<32x256xf32, #tpu.memory_space<vmem>>, vector<32x256xf32>,
    %c0_18 = arith.constant 0 : index
    %c0_19 = arith.constant 0 : index
    %33 = vector.load %arg8[%c0_18, %c0_19] : memref<32x256xf32, #tpu.memory_space<vmem>>, vector<32x256xf32>
    %34 = arith.addf %33, %19 : vector<32x256xf32>
    %c0_20 = arith.constant 0 : index
    %c0_21 = arith.constant 0 : index
    %35 = vector.load %arg8[%c0_20, %c0_21] : memref<32x256xf32, #tpu.memory_space<vmem>>, vector<32x256xf32>
    tpu.vector_store %arg8[%c0_20, %c0_21], %34 {strides = array<i32>} : memref<32x256xf32, #tpu.memory_space<vmem>>, vector<32x256xf32>,
    %c0_22 = arith.constant 0 : index
    %c0_23 = arith.constant 0 : index
    %36 = vector.load %arg9[%c0_22, %c0_23] : memref<32x256xf32, #tpu.memory_space<vmem>>, vector<32x256xf32>
    %37 = arith.addf %36, %25 : vector<32x256xf32>
    %c0_24 = arith.constant 0 : index
    %c0_25 = arith.constant 0 : index
    %38 = vector.load %arg9[%c0_24, %c0_25] : memref<32x256xf32, #tpu.memory_space<vmem>>, vector<32x256xf32>
    tpu.vector_store %arg9[%c0_24, %c0_25], %37 {strides = array<i32>} : memref<32x256xf32, #tpu.memory_space<vmem>>, vector<32x256xf32>,
    %cst_26 = arith.constant dense<0.000000e+00> : vector<256xf32>
    %39 = vector.multi_reduction <add>, %19, %cst_26 [0] : vector<32x256xf32> to vector<256xf32>
    %40 = vector.shape_cast %39 : vector<256xf32> to vector<1x256xf32>
    %cst_27 = arith.constant dense<0.000000e+00> : vector<256xf32>
    %41 = vector.multi_reduction <add>, %8, %cst_27 [0] : vector<32x256xf32> to vector<256xf32>
    %42 = vector.shape_cast %41 : vector<256xf32> to vector<1x256xf32>
    %cst_28 = arith.constant dense<0.000000e+00> : vector<256xf32>
    %43 = vector.multi_reduction <add>, %26, %cst_28 [0] : vector<32x256xf32> to vector<256xf32>
    %44 = vector.shape_cast %43 : vector<256xf32> to vector<1x256xf32>
    %cst_29 = arith.constant 9.99999997E-7 : f32
    %45 = vector.broadcast %cst_29 : f32 to vector<1x256xf32>
    %46 = arith.addf %40, %45 : vector<1x256xf32>
    %47 = arith.divf %44, %46 : vector<1x256xf32>
    %cst_30 = arith.constant 9.99999997E-7 : f32
    %48 = vector.broadcast %cst_30 : f32 to vector<1x256xf32>
    %49 = arith.addf %42, %48 : vector<1x256xf32>
    %50 = arith.divf %44, %49 : vector<1x256xf32>
    %cst_31 = arith.constant 5.000000e+00 : f32
    %51 = vector.broadcast %cst_31 : f32 to vector<1x256xf32>
    %52 = arith.mulf %51, %47 : vector<1x256xf32>
    %53 = arith.mulf %52, %50 : vector<1x256xf32>
    %cst_32 = arith.constant 4.000000e+00 : f32
    %54 = vector.broadcast %cst_32 : f32 to vector<1x256xf32>
    %55 = arith.mulf %54, %47 : vector<1x256xf32>
    %56 = arith.addf %55, %50 : vector<1x256xf32>
    %cst_33 = arith.constant 9.99999997E-7 : f32
    %57 = vector.broadcast %cst_33 : f32 to vector<1x256xf32>
    %58 = arith.addf %56, %57 : vector<1x256xf32>
    %59 = arith.divf %53, %58 : vector<1x256xf32>
    %c0_34 = arith.constant 0 : index
    %c0_35 = arith.constant 0 : index
    %60 = vector.load %arg10[%c0_34, %c0_35] : memref<1x256xf32, #tpu.memory_space<vmem>>, vector<1x256xf32>
    %61 = arith.addf %60, %59 : vector<1x256xf32>
    %c0_36 = arith.constant 0 : index
    %c0_37 = arith.constant 0 : index
    %62 = vector.load %arg10[%c0_36, %c0_37] : memref<1x256xf32, #tpu.memory_space<vmem>>, vector<1x256xf32>
    tpu.vector_store %arg10[%c0_36, %c0_37], %61 {strides = array<i32>} : memref<1x256xf32, #tpu.memory_space<vmem>>, vector<1x256xf32>,
    %c1_i32_38 = arith.constant 1 : i32
    %63 = arith.cmpi eq, %1, %c1_i32_38 : i32
    %64 = arith.extui %63 : i1 to i32
    %c0_i32_39 = arith.constant 0 : i32
    %65 = arith.cmpi ne, %64, %c0_i32_39 : i32
    scf.if %65 {
      %c0_40 = arith.constant 0 : index
      %c0_41 = arith.constant 0 : index
      %66 = vector.load %arg6[%c0_40, %c0_41] : memref<32x256xf32, #tpu.memory_space<vmem>>, vector<32x256xf32>
      %cst_42 = arith.constant dense<0.000000e+00> : vector<32xf32>
      %67 = vector.multi_reduction <add>, %66, %cst_42 [1] : vector<32x256xf32> to vector<32xf32>
      %68 = vector.shape_cast %67 : vector<32xf32> to vector<32x1xf32>
      %c0_43 = arith.constant 0 : index
      %c0_44 = arith.constant 0 : index
      %69 = vector.load %arg4[%c0_43, %c0_44] : memref<32x4xf32, #tpu.memory_space<vmem>>, vector<32x1xf32>
      tpu.vector_store %arg4[%c0_43, %c0_44], %68 {strides = array<i32>} : memref<32x4xf32, #tpu.memory_space<vmem>>, vector<32x1xf32>,
      %c0_45 = arith.constant 0 : index
      %c0_46 = arith.constant 0 : index
      %70 = vector.load %arg7[%c0_45, %c0_46] : memref<32x256xf32, #tpu.memory_space<vmem>>, vector<32x256xf32>
      %cst_47 = arith.constant dense<0.000000e+00> : vector<32xf32>
      %71 = vector.multi_reduction <add>, %70, %cst_47 [1] : vector<32x256xf32> to vector<32xf32>
      %72 = vector.shape_cast %71 : vector<32xf32> to vector<32x1xf32>
      %c0_48 = arith.constant 0 : index
      %c1 = arith.constant 1 : index
      %73 = vector.load %arg4[%c0_48, %c1] : memref<32x4xf32, #tpu.memory_space<vmem>>, vector<32x1xf32>
      tpu.vector_store %arg4[%c0_48, %c1], %72 {strides = array<i32>} : memref<32x4xf32, #tpu.memory_space<vmem>>, vector<32x1xf32>,
      %c0_49 = arith.constant 0 : index
      %c0_50 = arith.constant 0 : index
      %74 = vector.load %arg8[%c0_49, %c0_50] : memref<32x256xf32, #tpu.memory_space<vmem>>, vector<32x256xf32>
      %cst_51 = arith.constant dense<0.000000e+00> : vector<32xf32>
      %75 = vector.multi_reduction <add>, %74, %cst_51 [1] : vector<32x256xf32> to vector<32xf32>
      %76 = vector.shape_cast %75 : vector<32xf32> to vector<32x1xf32>
      %c0_52 = arith.constant 0 : index
      %c2 = arith.constant 2 : index
      %77 = vector.load %arg4[%c0_52, %c2] : memref<32x4xf32, #tpu.memory_space<vmem>>, vector<32x1xf32>
      tpu.vector_store %arg4[%c0_52, %c2], %76 {strides = array<i32>} : memref<32x4xf32, #tpu.memory_space<vmem>>, vector<32x1xf32>,
      %c0_53 = arith.constant 0 : index
      %c0_54 = arith.constant 0 : index
      %78 = vector.load %arg9[%c0_53, %c0_54] : memref<32x256xf32, #tpu.memory_space<vmem>>, vector<32x256xf32>
      %cst_55 = arith.constant dense<0.000000e+00> : vector<32xf32>
      %79 = vector.multi_reduction <add>, %78, %cst_55 [1] : vector<32x256xf32> to vector<32xf32>
      %80 = vector.shape_cast %79 : vector<32xf32> to vector<32x1xf32>
      %c0_56 = arith.constant 0 : index
      %c3 = arith.constant 3 : index
      %81 = vector.load %arg4[%c0_56, %c3] : memref<32x4xf32, #tpu.memory_space<vmem>>, vector<32x1xf32>
      tpu.vector_store %arg4[%c0_56, %c3], %80 {strides = array<i32>} : memref<32x4xf32, #tpu.memory_space<vmem>>, vector<32x1xf32>,
      %c0_57 = arith.constant 0 : index
      %c0_58 = arith.constant 0 : index
      %82 = vector.load %arg10[%c0_57, %c0_58] : memref<1x256xf32, #tpu.memory_space<vmem>>, vector<1x256xf32>
      %83 = vector.shape_cast %82 : vector<1x256xf32> to vector<1x1x256xf32>
      %cst_59 = arith.constant dense<0.000000e+00> : vector<1xf32>
      %84 = vector.multi_reduction <add>, %83, %cst_59 [1, 2] : vector<1x1x256xf32> to vector<1xf32>
      %85 = vector.shape_cast %84 : vector<1xf32> to vector<1x1x1xf32>
      %86 = vector.extract %85[0, 0, 0] : f32 from vector<1x1x1xf32>
      %c0_60 = arith.constant 0 : index
      %c0_61 = arith.constant 0 : index
      %87 = memref.load %arg5[%c0_60, %c0_61] : memref<1x1xf32, #tpu.memory_space<smem>>
      memref.store %86, %arg5[%c0_60, %c0_61] : memref<1x1xf32, #tpu.memory_space<smem>>
    } else {
    }
    return
  }
  func.func @transform_0(%arg0: i32, %arg1: i32) -> (i32, i32, i32) {
    %c0_i32 = arith.constant 0 : i32
    %c0_i32_0 = arith.constant 0 : i32
    return %arg0, %c0_i32, %arg1 : i32, i32, i32
  }
  func.func @transform_1(%arg0: i32, %arg1: i32) -> (i32, i32, i32) {
    %c0_i32 = arith.constant 0 : i32
    %c0_i32_0 = arith.constant 0 : i32
    return %arg0, %c0_i32, %arg1 : i32, i32, i32
  }
  func.func @transform_2(%arg0: i32, %arg1: i32) -> (i32, i32) {
    %c0_i32 = arith.constant 0 : i32
    %c0_i32_0 = arith.constant 0 : i32
    %c0_i32_1 = arith.constant 0 : i32
    return %c0_i32, %c0_i32_0 : i32, i32
  }
  func.func @transform_3(%arg0: i32, %arg1: i32) -> (i32, i32) {
    %c0_i32 = arith.constant 0 : i32
    %c0_i32_0 = arith.constant 0 : i32
    %c0_i32_1 = arith.constant 0 : i32
    return %c0_i32, %c0_i32_0 : i32, i32
  }
}

</mosaic_0001>

<bundles_post_ra>
// kernel: tpu_custom_call.1
= control target key start
LH: loop header
LB: loop body
LE: loop exit
PB: predicated region body
PF: predicated region fallthrough
CT: control target
= control target key end

     0   :  { %9 = vsyncpa [#allocation8], 0  ;;  %s1763_s0 = inlined_call_operand.hbm [shape: f32[2,32,256], index: 0, kind: input, shape index: {}]   ;;  %s1764_s1 = inlined_call_operand.hbm [shape: f32[2,32,256], index: 1, kind: input, shape index: {}]   ;;  %s1765_s2 = inlined_call_operand.vmem [shape: f32[32,4], index: 2, kind: output, shape index: {0}]   ;;  %s1766_s3 = inlined_call_operand.hbm [shape: f32[1,1], index: 3, kind: output, shape index: {1}]  }
   0x1   :  { %11 = vsyncpa [#allocation8 + $0x1], 0 }
   0x2   :  { %12 = vsyncpa [#allocation11], 0 }
   0x3   :  { %14 = vsyncpa [#allocation11 + $0x1], 0 }
   0x4   :  { %15 = vsyncpa [#allocation9], 0  ;;  %s1223_s12 = smov 0   ;;  %s1225_s13 = smov 0  }
   0x5   :  { %s1227_s14 = smov 0   ;;  %s1229_s15 = smov 0  }
   0x6   :  { %s1231_s16 = smov 0   ;;  %s1233_s17 = smov 0  }
   0x7 LB: > { %s911_s18 = sadd.s32 4294967295, %s1194_s17   ;;  %s33_s19 = sadd.s32 1, %s1190_s16  ;;  %s1194_s17 = sphi %s1233_s17, %s21_s17   ;;  %s1190_s16 = sphi %s1231_s16, %s1794_s16   ;;  %s1186_s15 = sphi %s1229_s15, %s1793_s15   ;;  %s1182_s14 = sphi %s1227_s14, %s1792_s14   ;;  %s1178_s13 = sphi %s1225_s13, %s1791_s13   ;;  %s1174_s12 = sphi %s1223_s12, %s1790_s12  }
   0x8   : > { %p35_p0 = scmp.ge.s32.totalorder %s33_s19, 2  ;;  %s42_s20 = sadd.s32 1, %s1182_s14 }
   0x9   : > { %p49_p1 = scmp.ne.s32.totalorder %s1182_s14, %s1178_s13  ;;  %p50_p2 = scmp.eq.s32.totalorder %s1194_s17, 0 }
   0xa   : > { %s1796_s19 = smov (%p35_p0, %s33_s19), 0  ;;  %p55_p4 = scmp.ne.s32.totalorder %s1178_s13, %s1174_s12 }
   0xb   : > { %p1259_p3 = por %p50_p2, %p49_p1  ;;  %s37_s22 = ssub.s32 %s1190_s16, %s1796_s19 }
   0xc   : > { %p56_p5 = scmp.eq.s32.totalorder %s911_s18, 0  ;;  %p40_p6 = scmp.eq.s32.totalorder %s37_s22, 0 }
   0xd   : > { %p948_p8 = scmp.lt.s32.totalorder %s1194_s17, 2  ;;  %s1277_s25 = sand.u32 1, %s1182_s14  }
   0xe   : > { %p1268_p7 = por %p56_p5, %p55_p4  ;;  %s929_s26 = sshll.u32 %s1190_s16, 10 }
   0xf   : > { %s1274_s24 = scalar_select %p40_p6, %s1182_s14, %s42_s20  }
  0x10   : > { %s1773_s23 = scalar_select %p1268_p7, 1, 0 }
  0x11   : > { %s914_s27 = sshll.u32 %s1277_s25, 6  ;;  %s1286_s30 = scalar_lea.hbm %s1763_s0, %s929_s26 }
  0x12   : > { %s153_s4 = scalar_lea.vmem [#allocation7], %s914_s27  ;;  %p1292_p9 = pnand %p948_p8, %p1259_p3 }
  0x13   : > { %s162_s5 = sshll.u32 %s153_s4, 4  ;;  %s150_s7 = scalar_lea.sflag [#allocation8], %s1277_s25  ;;  %s1296_s5 = int_to_ptr.vmem [resolvable:$true] %s162_s5 }
  0x14   : > { %s1064_s8 = scalar_lea.hbm %s1286_s30, 1024  ;;  %p1066_p11 = pneg %p1292_p9 }
  0x15   : > { %p1065_p10 = scmp.ne.s32.totalorder %s1286_s30, %s1064_s8  ;;  %s1069_s11 = scalar_lea.hbm %s1763_s0, 2048 }
  0x16   : > { %p1070_p0 = scmp.lt.u32.totalorder %s1286_s30, %s1763_s0  ;;  %p1071_p1 = scmp.lt.u32.totalorder %s1069_s11, %s1064_s8 }
  0x17   : > { %p1067_p12 = pnand %p1066_p11, %p1065_p10  ;;  %p1073_p3 = scmp.lt.u32.totalorder %s1064_s8, %s1286_s30 }
  0x18   : > { %p1072_p2 = por %p1071_p1, %p1070_p0 }
  0x19   : > { %p1068_p13 = pneg %p1067_p12 }
  0x1a   : > { %p1074_p4 = por %p1073_p3, %p1072_p2 }
  0x1c   : > { %p1075_p5 = pnand %p1074_p4, %p1068_p13 }
  0x1e   : > { %1078 = shalt.err (!%p1075_p5)
}
  0x1f   : > { %s1079_s21 = scalar_lea.vmem %s1296_s5, 1024  ;;  %s1196_s22 = smov [#allocation7]  }
  0x20   : > { %p1080_p6 = scmp.ne.s32.totalorder %s1296_s5, %s1079_s21  ;;  %s1084_s28 = sshll.u32 %s1196_s22, 4  ;;  %s1085_s28 = int_to_ptr.vmem [resolvable:$false] %s1084_s28 }
  0x21   : > { %s1086_s29 = scalar_lea.vmem %s1085_s28, 2048  ;;  %p1087_p12 = scmp.lt.s32.totalorder %s1296_s5, %s1085_s28 }
  0x22   : > { %p1082_p8 = pnand %p1080_p6, %p1066_p11  ;;  %p1088_p0 = scmp.lt.s32.totalorder %s1086_s29, %s1079_s21 }
  0x24   : > { %p1083_p10 = pneg %p1082_p8  ;;  %p1089_p1 = por %p1088_p0, %p1087_p12 }
  0x26   : > { %p1090_p2 = pnand %p1089_p1, %p1083_p10 }
  0x28   : > { %1093 = shalt.err (!%p1090_p2)
}
  0x29   : > { %s1197_s4 = smov 256   ;;  %s1198_s8 = smov 16  }
  0x2a   : > { %944 = dma.hbm_to_vmem [thread:$0]  (!%p1292_p9), %s1286_s30, 1024, %s1296_s5, %s150_s7, %s1197_s4, %s1197_s4, %s1198_s8  }
  0x2b   : > { %p920_p13 = scmp.ge.s32.totalorder %s1194_s17, 1  ;;  %p193_p3 = scmp.lt.s32.totalorder %s1194_s17, 3 }
  0x2c   : > { %s1340_s12 = scalar_lea.hbm %s1764_s1, %s929_s26  ;;  %s176_s20 = scalar_lea.vmem [#allocation10], %s914_s27 }
  0x2d   : > { %p1331_p4 = pnand %p920_p13, %p193_p3  ;;  %s185_s21 = sshll.u32 %s176_s20, 4  ;;  %s1344_s21 = int_to_ptr.vmem [resolvable:$true] %s185_s21 }
  0x2e   : > { %s173_s30 = scalar_lea.sflag [#allocation11], %s1277_s25  ;;  %s1094_s5 = scalar_lea.hbm %s1340_s12, 1024 }
  0x2f   : > { %p1095_p5 = scmp.ne.s32.totalorder %s1340_s12, %s1094_s5  ;;  %s1099_s26 = scalar_lea.hbm %s1764_s1, 2048 }
  0x30   : > { %p1100_p10 = scmp.lt.u32.totalorder %s1340_s12, %s1764_s1  ;;  %p1101_p12 = scmp.lt.u32.totalorder %s1099_s26, %s1094_s5 }
  0x31   : > { %p1097_p6 = pnand %p1095_p5, %p1066_p11  ;;  %p1103_p1 = scmp.lt.u32.totalorder %s1094_s5, %s1340_s12 }
  0x32   : > { %p1102_p0 = por %p1101_p12, %p1100_p10 }
  0x33   : > { %p1098_p8 = pneg %p1097_p6 }
  0x34   : > { %p1104_p2 = por %p1103_p1, %p1102_p0 }
  0x36   : > { %p1105_p13 = pnand %p1104_p2, %p1098_p8 }
  0x38   : > { %1108 = shalt.err (!%p1105_p13)
}
  0x39   : > { %s1109_s27 = scalar_lea.vmem %s1344_s21, 1024  ;;  %s1199_s10 = smov [#allocation10]  }
  0x3a   : > { %p1110_p3 = scmp.ne.s32.totalorder %s1344_s21, %s1109_s27  ;;  %s1114_s11 = sshll.u32 %s1199_s10, 4  ;;  %s1115_s11 = int_to_ptr.vmem [resolvable:$false] %s1114_s11 }
  0x3b   : > { %s1116_s20 = scalar_lea.vmem %s1115_s11, 2048  ;;  %p1117_p7 = scmp.lt.s32.totalorder %s1344_s21, %s1115_s11 }
  0x3c   : > { %p1112_p5 = pnand %p1110_p3, %p1066_p11  ;;  %p1118_p10 = scmp.lt.s32.totalorder %s1116_s20, %s1109_s27 }
  0x3e   : > { %p1113_p6 = pneg %p1112_p5  ;;  %p1119_p12 = por %p1118_p10, %p1117_p7 }
  0x40   : > { %p1120_p0 = pnand %p1119_p12, %p1113_p6 }
  0x42   : > { %1123 = shalt.err (!%p1120_p0)
}
  0x43   : > { %947 = dma.hbm_to_vmem [thread:$0]  (!%p1292_p9), %s1340_s12, 1024, %s1344_s21, %s173_s30, %s1197_s4, %s1197_s4, %s1198_s8  }
  0x44   : > { %197 = sbr.rel (%p1331_p4) target bundleno = 433 (0x1b1), region = 28 }
  0x4b   : > { %s199_s5 = sand.u32 1, %s1178_s13   ;;  %p1776_p7 = scmp.ne.s32.totalorder %s1773_s23, 0 }
  0x4c   : > { %s921_s7 = sshll.u32 %s199_s5, 6  ;;  %s200_s22 = scalar_lea.sflag [#allocation8], %s199_s5 }
  0x4d   : > { %s1378_s26 = scalar_lea.vmem [#allocation7], %s921_s7 }
  0x4e   : > { %1161 = dma.done.wait (%p1776_p7), %s200_s22, 1024  }
  0x4f   : > { %1163 = vsyncadd (%p1776_p7), %s200_s22, 4294966272  ;;  %s209_s25 = scalar_lea.sflag [#allocation11], %s199_s5  ;;  %s1384_s6 = scalar_lea.vmem [#allocation10], %s921_s7 }
  0x50   : > { %1165 = dma.done.wait (%p1776_p7), %s209_s25, 1024  }
  0x51   : > { %1167 = vsyncadd (%p1776_p7), %s209_s25, 4294966272  ;;  %p923_p9 = scmp.ne.s32.totalorder %s1186_s15, 0 }
  0x52   : > { %v274_v0 = vlaneseq (!%p923_p9)  ;;  %v1200_v1 = vmov (!%p923_p9), 0.0  }
  0x53   : > { %241 = sbr.rel (%p923_p9) target bundleno = 100 (0x64), region = 40  ;;  %242 = vst [vmem:[#allocation2] sm:$0xff] (!%p923_p9), %v1200_v1  ;;  %243 = vst [vmem:[#allocation2 + $0x8] sm:$0xff] (!%p923_p9), %v1200_v1 }
  0x54   : > { %244 = vst [vmem:[#allocation2 + $0x10] sm:$0xff] (!%p923_p9), %v1200_v1  ;;  %245 = vst [vmem:[#allocation2 + $0x18] sm:$0xff] (!%p923_p9), %v1200_v1  ;;  %vm276_vm0 = vcmp.lt.s32.totalorder (!%p923_p9), %v274_v0, 256 }
  0x55   : > { %246 = vst [vmem:[#allocation2 + $0x20] sm:$0xff] (!%p923_p9), %v1200_v1  ;;  %247 = vst [vmem:[#allocation2 + $0x28] sm:$0xff] (!%p923_p9), %v1200_v1 }
  0x56   : > { %248 = vst [vmem:[#allocation2 + $0x30] sm:$0xff] (!%p923_p9), %v1200_v1  ;;  %249 = vst [vmem:[#allocation2 + $0x38] sm:$0xff] (!%p923_p9), %v1200_v1 }
  0x57   : > { %250 = vst [vmem:[#allocation3] sm:$0xff] (!%p923_p9), %v1200_v1  ;;  %251 = vst [vmem:[#allocation3 + $0x8] sm:$0xff] (!%p923_p9), %v1200_v1 }
  0x58   : > { %252 = vst [vmem:[#allocation3 + $0x10] sm:$0xff] (!%p923_p9), %v1200_v1  ;;  %253 = vst [vmem:[#allocation3 + $0x18] sm:$0xff] (!%p923_p9), %v1200_v1 }
  0x59   : > { %254 = vst [vmem:[#allocation3 + $0x20] sm:$0xff] (!%p923_p9), %v1200_v1  ;;  %255 = vst [vmem:[#allocation3 + $0x28] sm:$0xff] (!%p923_p9), %v1200_v1 }
  0x5a   : > { %256 = vst [vmem:[#allocation3 + $0x30] sm:$0xff] %v1200_v1  ;;  %257 = vst [vmem:[#allocation3 + $0x38] sm:$0xff] %v1200_v1 }
  0x5b   : > { %258 = vst [vmem:[#allocation4] sm:$0xff] %v1200_v1  ;;  %259 = vst [vmem:[#allocation4 + $0x8] sm:$0xff] %v1200_v1 }
  0x5c   : > { %260 = vst [vmem:[#allocation4 + $0x10] sm:$0xff] %v1200_v1  ;;  %261 = vst [vmem:[#allocation4 + $0x18] sm:$0xff] %v1200_v1 }
  0x5d   : > { %262 = vst [vmem:[#allocation4 + $0x20] sm:$0xff] %v1200_v1  ;;  %263 = vst [vmem:[#allocation4 + $0x28] sm:$0xff] %v1200_v1 }
  0x5e   : > { %264 = vst [vmem:[#allocation4 + $0x30] sm:$0xff] %v1200_v1  ;;  %265 = vst [vmem:[#allocation4 + $0x38] sm:$0xff] %v1200_v1 }
  0x5f   : > { %266 = vst [vmem:[#allocation5] sm:$0xff] %v1200_v1  ;;  %267 = vst [vmem:[#allocation5 + $0x8] sm:$0xff] %v1200_v1 }
  0x60   : > { %268 = vst [vmem:[#allocation5 + $0x10] sm:$0xff] %v1200_v1  ;;  %269 = vst [vmem:[#allocation5 + $0x18] sm:$0xff] %v1200_v1 }
  0x61   : > { %270 = vst [vmem:[#allocation5 + $0x20] sm:$0xff] %v1200_v1  ;;  %271 = vst [vmem:[#allocation5 + $0x28] sm:$0xff] %v1200_v1 }
  0x62   : > { %272 = vst [vmem:[#allocation5 + $0x30] sm:$0xff] %v1200_v1  ;;  %273 = vst [vmem:[#allocation5 + $0x38] sm:$0xff] %v1200_v1 }
  0x63   : > { %278 = vst.msk [vmem:[#allocation6] sm:$0x3] %vm276_vm0, %v1200_v1 }
  0x64 PF: > { %v1392_v2 = vld [vmem:[%s1378_s26] sm:$0xff]  ;;  %v1399_v5 = vld [vmem:[%s1378_s26 + $0x8] sm:$0xff]  ;;  %v1406_v8 = vld [vmem:[%s1378_s26 + $0x10] sm:$0xff]  ;;  %p924_p11 = scmp.ne.s32.totalorder %s1186_s15, 1 }
  0x65   : > { %v1395_v3 = vld [vmem:[%s1384_s6] sm:$0xff]  ;;  %v295_v4 = vand.u32 2147483647, %v1392_v2  ;;  %v1402_v6 = vld [vmem:[%s1384_s6 + $0x8] sm:$0xff]  ;;  %v296_v7 = vand.u32 2147483647, %v1399_v5 }
  0x66   : > { %v1409_v9 = vld [vmem:[%s1384_s6 + $0x10] sm:$0xff]  ;;  %v297_v11 = vand.u32 2147483647, %v1406_v8  ;;  %v1415_v13 = vld [vmem:[%s1378_s26 + $0x18] sm:$0xff]  ;;  %v1424_v18 = vld [vmem:[%s1378_s26 + $0x20] sm:$0xff]  ;;  %v1455_v41 = vmul.f32 %v1395_v3, %v1392_v2  ;;  %v1462_v52 = vmul.f32 %v1402_v6, %v1399_v5  ;;  %vm327_vm1 = vcmp.ge.f32.partialorder %v1392_v2, 0.0 }
  0x67   : > { %v303_v10 = vsub.f32 0.0, %v295_v4  ;;  %v593_v12 = vadd.f32 %v1409_v9, %v1395_v3  ;;  %v1418_v14 = vld [vmem:[%s1384_s6 + $0x18] sm:$0xff]  ;;  %v304_v15 = vsub.f32 0.0, %v296_v7  ;;  %v298_v16 = vand.u32 2147483647, %v1415_v13  ;;  %v1427_v21 = vld [vmem:[%s1384_s6 + $0x20] sm:$0xff] }
  0x68   : > { %v602_v17 = vadd.f32 %v1418_v14, %v1402_v6  ;;  %v305_v20 = vsub.f32 0.0, %v297_v11  ;;  %v299_v22 = vand.u32 2147483647, %v1424_v18  ;;  %v1432_v26 = vld [vmem:[%s1378_s26 + $0x28] sm:$0xff]  ;;  %v1440_v33 = vld [vmem:[%s1378_s26 + $0x30] sm:$0xff]  ;;  %v1448_v39 = vld [vmem:[%s1378_s26 + $0x38] sm:$0xff] }
  0x69   : > { %v311_v19 = vmul.f32 1.442695, %v303_v10  ;;  %v313_v23 = vmul.f32 1.442695, %v304_v15  ;;  %v306_v24 = vsub.f32 0.0, %v298_v16  ;;  %v594_v25 = vadd.f32 %v593_v12, %v1427_v21  ;;  %v1435_v29 = vld [vmem:[%s1384_s6 + $0x28] sm:$0xff] }
  0x6a   : > { %v315_v27 = vmul.f32 1.442695, %v305_v20  ;;  %v307_v28 = vsub.f32 0.0, %v299_v22  ;;  %v300_v30 = vand.u32 2147483647, %v1432_v26  ;;  %v603_v32 = vadd.f32 %v602_v17, %v1435_v29  ;;  %1777 = vst [vmem:[#allocation16_spill] sm:$0xff] %v1440_v33 }
  0x6b   : > { %1004 = vpow2.f32 %v311_v19  ;;  %v317_v31 = vmul.f32 1.442695, %v306_v24  ;;  %v1443_v34 = vld [vmem:[%s1384_s6 + $0x30] sm:$0xff]  ;;  %v301_v37 = vand.u32 2147483647, %v1440_v33  ;;  %1778 = vst [vmem:[#allocation17_spill] sm:$0xff] %v1448_v39  ;;  %v377_v17 = vmul.f32 %v1409_v9, %v1406_v8 }
  0x6c   : > { %1006 = vpow2.f32 %v313_v23  ;;  %v319_v35 = vmul.f32 1.442695, %v307_v28  ;;  %v308_v36 = vsub.f32 0.0, %v300_v30  ;;  %v595_v38 = vadd.f32 %v594_v25, %v1443_v34  ;;  %v1451_v40 = vld [vmem:[%s1384_s6 + $0x38] sm:$0xff]  ;;  %v504_v49 = vld [vmem:[#allocation3 + $0x8] sm:$0xff]  ;;  %v505_v50 = vld [vmem:[#allocation3 + $0x10] sm:$0xff] }
  0x6d   : > { %1008 = vpow2.f32 %v315_v27  ;;  %v309_v43 = vsub.f32 0.0, %v301_v37  ;;  %v302_v44 = vand.u32 2147483647, %v1448_v39  ;;  %v503_v45 = vld [vmem:[#allocation3] sm:$0xff]  ;;  %v604_v47 = vadd.f32 %v603_v32, %v1451_v40  ;;  %v506_v51 = vld [vmem:[#allocation3 + $0x18] sm:$0xff]  ;;  %v508_v57 = vld [vmem:[#allocation3 + $0x28] sm:$0xff] }
  0x6e   : > { %1010 = vpow2.f32 %v317_v31  ;;  %v321_v42 = vmul.f32 1.442695, %v308_v36  ;;  %v596_v46 = vrot.slane %v595_v38, 4  ;;  %v511_v48 = vadd.f32 %v503_v45, %v1395_v3  ;;  %v507_v56 = vld [vmem:[#allocation3 + $0x20] sm:$0xff]  ;;  %v509_v58 = vld [vmem:[#allocation3 + $0x30] sm:$0xff]  ;;  %v510_v63 = vld [vmem:[#allocation3 + $0x38] sm:$0xff] }
  0x6f   : > { %1012 = vpow2.f32 %v319_v35  ;;  %vm328_vm2 = vcmp.ge.f32.partialorder %v1399_v5, 0.0  ;;  %v323_v53 = vmul.f32 1.442695, %v309_v43  ;;  %v310_v54 = vsub.f32 0.0, %v302_v44 }
  0x70   : > { %1014 = vpow2.f32 %v321_v42  ;;  %v512_v55 = vadd.f32 %v504_v49, %v1402_v6  ;;  %vm329_vm3 = vcmp.ge.f32.partialorder %v1406_v8, 0.0  ;;  %v597_v59 = vadd.f32 %v596_v46, %v595_v38  ;;  %519 = vst [vmem:[#allocation3] sm:$0xff] %v511_v48 }
  0x71   : > { %v605_v60 = vrot.slane %v604_v47, 4  ;;  %v513_v61 = vadd.f32 %v505_v50, %v1409_v9  ;;  %v514_v62 = vadd.f32 %v506_v51, %v1418_v14  ;;  %1016 = vpow2.f32 %v323_v53 }
  0x72   : > { %v325_v0 = vmul.f32 1.442695, %v310_v54  ;;  %520 = vst [vmem:[#allocation3 + $0x8] sm:$0xff] %v512_v55  ;;  %v515_v1 = vadd.f32 %v507_v56, %v1427_v21  ;;  %v516_v4 = vadd.f32 %v508_v57, %v1435_v29  ;;  %v598_v7 = vrot.slane %v597_v59, 2 }
  0x73   : > { %v606_v10 = vadd.f32 %v605_v60, %v604_v47  ;;  %521 = vst [vmem:[#allocation3 + $0x10] sm:$0xff] %v513_v61  ;;  %522 = vst [vmem:[#allocation3 + $0x18] sm:$0xff] %v514_v62  ;;  %v517_v11 = vadd.f32 %v509_v58, %v1443_v34  ;;  %v518_v12 = vadd.f32 %v510_v63, %v1451_v40  ;;  %vm330_vm4 = vcmp.ge.f32.partialorder %v1415_v13, 0.0 }
  0x74   : > { %1018 = vpow2.f32 %v325_v0  ;;  %523 = vst [vmem:[#allocation3 + $0x20] sm:$0xff] %v515_v1  ;;  %524 = vst [vmem:[#allocation3 + $0x28] sm:$0xff] %v516_v4  ;;  %v367_v16 = vmax.f32 %v1392_v2, 0.0  ;;  %vm331_vm5 = vcmp.ge.f32.partialorder %v1424_v18, 0.0  ;;  %v599_v22 = vadd.f32 %v598_v7, %v597_v59 }
  0x75   : > { %v1474_v15 = vpop.eup %1004  ;;  %v607_v23 = vrot.slane %v606_v10, 2  ;;  %525 = vst [vmem:[#allocation3 + $0x30] sm:$0xff] %v517_v11  ;;  %526 = vst [vmem:[#allocation3 + $0x38] sm:$0xff] %v518_v12  ;;  %vm332_vm6 = vcmp.ge.f32.partialorder %v1432_v26, 0.0  ;;  %vm333_vm7 = vcmp.ge.f32.partialorder %v1440_v33, 0.0  ;;  %vm334_vm8 = vcmp.ge.f32.partialorder %v1448_v39, 0.0 }
  0x76   : > { %v1480_v19 = vpop.eup %1006  ;;  %v343_v20 = vadd.f32 1.0, %v1474_v15  ;;  %v394_v27 = vmul.f32 -0.5, %v1474_v15  ;;  %v600_v31 = vrot.slane %v599_v22, 1  ;;  %v1500_v37 = vsub.f32 %v367_v16, %v1455_v41  ;;  %v483_v33 = vld [vmem:[#allocation2 + $0x20] sm:$0xff] }
  0x77   : > { %v1484_v24 = vpop.eup %1008  ;;  %v344_v25 = vadd.f32 1.0, %v1480_v19  ;;  %v608_v36 = vadd.f32 %v607_v23, %v606_v10  ;;  %v368_v42 = vmax.f32 %v1399_v5, 0.0  ;;  %v369_v43 = vmax.f32 %v1406_v8, 0.0 }
  0x78   : > { %v1490_v28 = vpop.eup %1010  ;;  %1020 = vrcp.f32 %v343_v20  ;;  %v345_v30 = vadd.f32 1.0, %v1484_v24  ;;  %v601_v45 = vadd.f32 %v600_v31, %v599_v22  ;;  %v395_v47 = vadd.f32 1.0, %v394_v27  ;;  %v479_v31 = vld [vmem:[#allocation2] sm:$0xff] }
  0x79   : > { %v1494_v32 = vpop.eup %1012  ;;  %1022 = vrcp.f32 %v344_v25  ;;  %v1497_v35 = vadd.f32 1.0, %v1490_v28  ;;  %v609_v46 = vrot.slane %v608_v36, 1  ;;  %v335_v41 = vsel %vm327_vm1, 1.0, %v1474_v15 }
  0x7a   : > { %1024 = vrcp.f32 %v345_v30  ;;  %v1503_v38 = vadd.f32 1.0, %v1494_v32  ;;  %v1507_v44 = vpop.eup %1014  ;;  %v336_v48 = vsel %vm328_vm2, 1.0, %v1480_v19  ;;  %v337_v51 = vsel %vm329_vm3, 1.0, %v1484_v24 }
  0x7b   : > { %1026 = vrcp.f32 %v1497_v35  ;;  %v1518_v49 = vadd.f32 1.0, %v1507_v44  ;;  %v1520_v50 = vpop.eup %1016  ;;  %v338_v2 = vsel %vm330_vm4, 1.0, %v1490_v28  ;;  %v339_v5 = vsel %vm331_vm5, 1.0, %v1494_v32 }
  0x7c   : > { %1028 = vrcp.f32 %v1503_v38  ;;  %v397_v53 = vand.u32 2147483647, %v1474_v15  ;;  %v1535_v54 = vsel %vm332_vm6, 1.0, %v1507_v44  ;;  %v1539_v8 = vadd.f32 1.0, %v1520_v50 }
  0x7d   : > { %1030 = vrcp.f32 %v1518_v49  ;;  %v403_v55 = vmul.f32 -0.5, %v1480_v19  ;;  %v1544_v57 = vadd.f32 1e-06, %v601_v45  ;;  %v1546_v58 = vadd.f32 %v609_v46, %v608_v36  ;;  %v480_v46 = vld [vmem:[#allocation2 + $0x8] sm:$0xff] }
  0x7e   : > { %v1542_v56 = vpop.eup %1018  ;;  %1032 = vlog2.f32 %v343_v20  ;;  %v1549_v59 = vmul.f32 %v1474_v15, %v395_v47  ;;  %v1556_v61 = vsub.f32 %v368_v42, %v1462_v52  ;;  %v1561_v63 = vsel %vm333_vm7, 1.0, %v1520_v50  ;;  %v527_v52 = vld [vmem:[#allocation4] sm:$0xff] }
  0x7f   : > { %1034 = vrcp.f32 %v1539_v8  ;;  %v1553_v60 = vadd.f32 1.0, %v1542_v56  ;;  %v404_v62 = vadd.f32 1.0, %v403_v55  ;;  %v406_v0 = vand.u32 2147483647, %v1480_v19 }
  0x80   : > { %v1564_v1 = vsub.f32 %v369_v43, %v377_v17  ;;  %v412_v4 = vmul.f32 -0.5, %v1484_v24  ;;  %v1570_v10 = vsel %vm334_vm8, 1.0, %v1542_v56  ;;  %v415_v12 = vand.u32 2147483647, %v1484_v24  ;;  %v528_v17 = vld [vmem:[#allocation4 + $0x8] sm:$0xff] }
  0x81   : > { %1036 = vrcp.f32 %v1553_v60  ;;  %v1574_v11 = vmul.f32 %v1480_v19, %v404_v62  ;;  %vm1577_vm9 = vcmp.lt.f32.partialorder %v397_v53, 0.0004427343  ;;  %v1584_v19 = vmul.f32 %v1418_v14, %v1415_v13  ;;  %v481_v62 = vld [vmem:[#allocation2 + $0x10] sm:$0xff] }
  0x82   : > { %v1021_v7 = vpop.eup %1020  ;;  %1038 = vlog2.f32 %v344_v25  ;;  %v413_v22 = vadd.f32 1.0, %v412_v4  ;;  %v1587_v42 = vmul.f32 -0.5, %v1490_v28  ;;  %vm1590_vm10 = vcmp.lt.f32.partialorder %v406_v0, 0.0004427343 }
  0x83   : > { %v1023_v15 = vpop.eup %1022  ;;  %v352_v16 = vmul.f32 %v1021_v7, %v335_v41  ;;  %1040 = vlog2.f32 %v345_v30  ;;  %v529_v41 = vld [vmem:[#allocation4 + $0x10] sm:$0xff]  ;;  %vm1602_vm11 = vcmp.lt.f32.partialorder %v415_v12, 0.0004427343  ;;  %v1785_v53 = vmax.f32 %v1415_v13, 0.0 }
  0x84   : > { %v1025_v27 = vpop.eup %1024  ;;  %v354_v36 = vmul.f32 %v1023_v15, %v336_v48  ;;  %v1595_v30 = vmul.f32 %v1484_v24, %v413_v22  ;;  %1042 = vlog2.f32 %v1497_v35  ;;  %v482_v15 = vld [vmem:[#allocation2 + $0x18] sm:$0xff]  ;;  %vm796_vm2 = vcmask (!%p924_p11), 1040384  }
  0x85   : > { %v1027_v43 = vpop.eup %1026  ;;  %v471_v45 = vmul.f32 %v352_v16, %v1395_v3  ;;  %v356_v47 = vmul.f32 %v1025_v27, %v337_v51  ;;  %v535_v25 = vadd.f32 %v527_v52, %v352_v16  ;;  %v530_v27 = vld [vmem:[#allocation4 + $0x18] sm:$0xff]  ;;  %1044 = vrcp.f32 %v1544_v57 }
  0x86   : > { %v1029_v48 = vpop.eup %1028  ;;  %v472_v55 = vmul.f32 %v354_v36, %v1402_v6  ;;  %v358_v4 = vmul.f32 %v1027_v43, %v338_v2  ;;  %v536_v7 = vadd.f32 %v528_v17, %v354_v36  ;;  %v531_v2 = vld [vmem:[#allocation4 + $0x20] sm:$0xff]  ;;  %v532_v43 = vld [vmem:[#allocation4 + $0x28] sm:$0xff]  ;;  %1046 = vlog2.f32 %v1503_v38 }
  0x87   : > { %v487_v3 = vadd.f32 %v479_v31, %v471_v45  ;;  %v473_v51 = vmul.f32 %v356_v47, %v1409_v9  ;;  %v575_v52 = vadd.f32 %v356_v47, %v352_v16  ;;  %v360_v0 = vmul.f32 %v1029_v48, %v339_v5  ;;  %543 = vst [vmem:[#allocation4] sm:$0xff] %v535_v25  ;;  %v1031_v23 = vpop.eup %1030 }
  0x88   : > { %v488_v39 = vadd.f32 %v480_v46, %v472_v55  ;;  %v474_v24 = vmul.f32 %v358_v4, %v1418_v14  ;;  %v584_v22 = vadd.f32 %v358_v4, %v354_v36  ;;  %544 = vst [vmem:[#allocation4 + $0x8] sm:$0xff] %v536_v7  ;;  %v537_v6 = vadd.f32 %v529_v41, %v356_v47  ;;  %v1033_v17 = vpop.eup %1032  ;;  %v533_v41 = vld [vmem:[#allocation4 + $0x30] sm:$0xff] }
  0x89   : > { %495 = vst [vmem:[#allocation2] sm:$0xff] %v487_v3  ;;  %v489_v35 = vadd.f32 %v481_v62, %v473_v51  ;;  %v611_v31 = vadd.f32 %v473_v51, %v471_v45  ;;  %v475_v9 = vmul.f32 %v360_v0, %v1427_v21  ;;  %v576_v16 = vadd.f32 %v575_v52, %v360_v0  ;;  %v1035_v46 = vpop.eup %1034  ;;  %v484_v62 = vld [vmem:[#allocation2 + $0x28] sm:$0xff] }
  0x8a   : > { %496 = vst [vmem:[#allocation2 + $0x8] sm:$0xff] %v488_v39  ;;  %v490_v14 = vadd.f32 %v482_v15, %v474_v24  ;;  %v620_v36 = vadd.f32 %v474_v24, %v472_v55  ;;  %v362_v25 = vmul.f32 %v1031_v23, %v1535_v54  ;;  %545 = vst [vmem:[#allocation4 + $0x10] sm:$0xff] %v537_v6  ;;  %v485_v39 = vld [vmem:[#allocation2 + $0x30] sm:$0xff]  ;;  %v393_v15 = vmul.f32 0.6931472, %v1033_v17 }
  0x8b   : > { %v538_v47 = vadd.f32 %v530_v27, %v358_v4  ;;  %497 = vst [vmem:[#allocation2 + $0x10] sm:$0xff] %v489_v35  ;;  %v491_v48 = vadd.f32 %v483_v33, %v475_v9  ;;  %v612_v45 = vadd.f32 %v611_v31, %v475_v9  ;;  %v364_v7 = vmul.f32 %v1035_v46, %v1561_v63  ;;  %v1037_v12 = vpop.eup %1036  ;;  %v534_v63 = vld [vmem:[#allocation4 + $0x38] sm:$0xff] }
  0x8c   : > { %v539_v3 = vadd.f32 %v531_v2, %v360_v0  ;;  %498 = vst [vmem:[#allocation2 + $0x18] sm:$0xff] %v490_v14  ;;  %v476_v51 = vmul.f32 %v362_v25, %v1435_v29  ;;  %v585_v52 = vadd.f32 %v584_v22, %v362_v25  ;;  %v540_v55 = vadd.f32 %v532_v43, %v362_v25  ;;  %v1039_v54 = vpop.eup %1038  ;;  %v486_v2 = vld [vmem:[#allocation2 + $0x38] sm:$0xff] }
  0x8d   : > { %546 = vst [vmem:[#allocation4 + $0x18] sm:$0xff] %v538_v47  ;;  %499 = vst [vmem:[#allocation2 + $0x20] sm:$0xff] %v491_v48  ;;  %v477_v23 = vmul.f32 %v364_v7, %v1443_v34  ;;  %v577_v4 = vadd.f32 %v576_v16, %v364_v7  ;;  %v366_v33 = vmul.f32 %v1037_v12, %v1570_v10  ;;  %v1041_v0 = vpop.eup %1040  ;;  %v402_v17 = vmul.f32 0.6931472, %v1039_v54  ;;  %v551_v10 = vld [vmem:[#allocation5] sm:$0xff]  ;;  %v552_v48 = vld [vmem:[#allocation5 + $0x8] sm:$0xff] }
  0x8e   : > { %547 = vst [vmem:[#allocation4 + $0x20] sm:$0xff] %v539_v3  ;;  %v541_v27 = vadd.f32 %v533_v41, %v364_v7  ;;  %v492_v24 = vadd.f32 %v484_v62, %v476_v51  ;;  %v621_v6 = vadd.f32 %v620_v36, %v476_v51  ;;  %548 = vst [vmem:[#allocation4 + $0x28] sm:$0xff] %v540_v55  ;;  %v1043_v43 = vpop.eup %1042  ;;  %v411_v3 = vmul.f32 0.6931472, %v1041_v0 }
  0x8f   : > { %v399_v22 = vsel %vm1577_vm9, %v1549_v59, %v393_v15  ;;  %v493_v35 = vadd.f32 %v485_v39, %v477_v23  ;;  %v578_v31 = vrot.slane %v577_v4, 4  ;;  %v613_v9 = vadd.f32 %v612_v45, %v477_v23  ;;  %v553_v15 = vld [vmem:[#allocation5 + $0x10] sm:$0xff] }
  0x90   : > { %v478_v16 = vmul.f32 %v366_v33, %v1451_v40  ;;  %549 = vst [vmem:[#allocation4 + $0x30] sm:$0xff] %v541_v27  ;;  %500 = vst [vmem:[#allocation2 + $0x28] sm:$0xff] %v492_v24  ;;  %v586_v46 = vadd.f32 %v585_v52, %v366_v33  ;;  %v542_v14 = vadd.f32 %v534_v63, %v366_v33  ;;  %v422_v54 = vadd.f32 1.0, %v1587_v42 }
  0x91   : > { %v463_v36 = vadd.f32 %v399_v22, %v1500_v37  ;;  %v408_v25 = vsel %vm1590_vm10, %v1574_v11, %v402_v17  ;;  %501 = vst [vmem:[#allocation2 + $0x30] sm:$0xff] %v493_v35  ;;  %v579_v59 = vadd.f32 %v578_v31, %v577_v4  ;;  %v614_v20 = vrot.slane %v613_v9, 4 }
  0x92   : > { %v494_v47 = vadd.f32 %v486_v2, %v478_v16  ;;  %v622_v41 = vadd.f32 %v621_v6, %v478_v16  ;;  %v587_v45 = vrot.slane %v586_v46, 4  ;;  %550 = vst [vmem:[#allocation4 + $0x38] sm:$0xff] %v542_v14  ;;  %v464_v7 = vadd.f32 %v408_v25, %v1556_v61  ;;  %v554_v2 = vld [vmem:[#allocation5 + $0x18] sm:$0xff]  ;;  %v1045_v25 = vpop.eup %1044 }
  0x93   : > { %v559_v62 = vadd.f32 %v551_v10, %v463_v36  ;;  %v580_v12 = vrot.slane %v579_v59, 2  ;;  %v615_v51 = vadd.f32 %v614_v20, %v613_v9  ;;  %v386_v11 = vsub.f32 %v1785_v53, %v1584_v19 }
  0x94   : > { %502 = vst [vmem:[#allocation2 + $0x38] sm:$0xff] %v494_v47  ;;  %v623_v37 = vrot.slane %v622_v41, 4  ;;  %v588_v52 = vadd.f32 %v587_v45, %v586_v46  ;;  %v560_v39 = vadd.f32 %v552_v48, %v464_v7  ;;  %v417_v55 = vsel %vm1602_vm11, %v1595_v30, %v411_v3 }
  0x95   : > { %567 = vst [vmem:[#allocation5] sm:$0xff] %v559_v62  ;;  %v581_v61 = vadd.f32 %v580_v12, %v579_v59  ;;  %v616_v23 = vrot.slane %v615_v51, 2  ;;  %v465_v4 = vadd.f32 %v417_v55, %v1564_v1  ;;  %v420_v33 = vmul.f32 0.6931472, %v1043_v43  ;;  %v555_v12 = vld [vmem:[#allocation5 + $0x20] sm:$0xff] }
  0x96   : > { %v589_v27 = vrot.slane %v588_v52, 2  ;;  %v624_v63 = vadd.f32 %v623_v37, %v622_v41  ;;  %568 = vst [vmem:[#allocation5 + $0x8] sm:$0xff] %v560_v39  ;;  %v423_v13 = vmul.f32 %v1490_v28, %v422_v54  ;;  %v424_v19 = vand.u32 2147483647, %v1490_v28  ;;  %v1047_v41 = vpop.eup %1046 }
  0x97   : > { %v582_v0 = vrot.slane %v581_v61, 1  ;;  %v561_v5 = vadd.f32 %v553_v15, %v465_v4  ;;  %v636_v24 = vadd.f32 1e-06, %v1546_v58  ;;  %v617_v1 = vadd.f32 %v616_v23, %v615_v51  ;;  %v689_v4 = vld [vmem:[#allocation2 + $0x28] sm:$0xff] (!%p924_p11) }
  0x98   : > { %v590_v30 = vadd.f32 %v589_v27, %v588_v52  ;;  %vm425_vm12 = vcmp.lt.f32.partialorder %v424_v19, 0.0004427343  ;;  %v625_v17 = vrot.slane %v624_v63, 2  ;;  %v430_v28 = vmul.f32 -0.5, %v1494_v32 }
  0x99   : > { %v583_v42 = vadd.f32 %v582_v0, %v581_v61  ;;  %569 = vst [vmem:[#allocation5 + $0x10] sm:$0xff] %v561_v5  ;;  %v426_v6 = vsel %vm425_vm12, %v423_v13, %v420_v33  ;;  %1048 = vrcp.f32 %v636_v24  ;;  %v371_v16 = vmax.f32 %v1424_v18, 0.0 }
  0x9a   : > { %v591_v22 = vrot.slane %v590_v30, 1  ;;  %v466_v35 = vadd.f32 %v426_v6, %v386_v11  ;;  %v618_v58 = vrot.slane %v617_v1, 1  ;;  %v379_v38 = vmul.f32 %v1427_v21, %v1424_v18  ;;  %v1786_v11 = vld [vmem:[#allocation16_spill] sm:$0xff] }
  0x9b   : > { %v629_v31 = vadd.f32 1e-06, %v583_v42  ;;  %v431_v10 = vadd.f32 1.0, %v430_v28  ;;  %v626_v43 = vadd.f32 %v625_v17, %v624_v63  ;;  %v433_v14 = vand.u32 2147483647, %v1494_v32  ;;  %v1789_v63 = vld [vmem:[#allocation17_spill] sm:$0xff] }
  0x9c   : > { %v592_v9 = vadd.f32 %v591_v22, %v590_v30  ;;  %v562_v57 = vadd.f32 %v554_v2, %v466_v35  ;;  %v439_v36 = vmul.f32 -0.5, %v1507_v44  ;;  %v619_v59 = vadd.f32 %v618_v58, %v617_v1  ;;  %v556_v6 = vld [vmem:[#allocation5 + $0x28] sm:$0xff]  ;;  %v557_v58 = vld [vmem:[#allocation5 + $0x30] sm:$0xff] }
  0x9d   : > { %1050 = vrcp.f32 %v629_v31  ;;  %v387_v20 = vsub.f32 %v371_v16, %v379_v38  ;;  %v432_v47 = vmul.f32 %v1494_v32, %v431_v10  ;;  %v627_v18 = vrot.slane %v626_v43, 1 }
  0x9e   : > { %v630_v46 = vadd.f32 1e-06, %v592_v9  ;;  %570 = vst [vmem:[#allocation5 + $0x18] sm:$0xff] %v562_v57  ;;  %1052 = vlog2.f32 %v1518_v49  ;;  %vm434_vm13 = vcmp.lt.f32.partialorder %v433_v14, 0.0004427343  ;;  %v372_v21 = vmax.f32 %v1432_v26, 0.0 }
  0x9f   : > { %v448_v48 = vmul.f32 -0.5, %v1520_v50  ;;  %v429_v45 = vmul.f32 0.6931472, %v1047_v41  ;;  %v380_v49 = vmul.f32 %v1435_v29, %v1432_v26  ;;  %v440_v62 = vadd.f32 1.0, %v439_v36  ;;  %v558_v14 = vld [vmem:[#allocation5 + $0x38] sm:$0xff] }
  0xa0   : > { %1054 = vrcp.f32 %v630_v46  ;;  %v442_v7 = vand.u32 2147483647, %v1507_v44  ;;  %v457_v32 = vmul.f32 -0.5, %v1542_v56  ;;  %v1649_v3 = vmul.f32 %v1045_v25, %v619_v59 }
  0xa1   : > { %1056 = vlog2.f32 %v1539_v8  ;;  %v435_v8 = vsel %vm434_vm13, %v432_v47, %v429_v45  ;;  %v628_v37 = vadd.f32 %v627_v18, %v626_v43  ;;  %v373_v52 = vmax.f32 %v1786_v11, 0.0 }
  0xa2   : > { %1058 = vlog2.f32 %v1553_v60  ;;  %v467_v53 = vadd.f32 %v435_v8, %v387_v20  ;;  %v449_v39 = vadd.f32 1.0, %v448_v48  ;;  %v388_v15 = vsub.f32 %v372_v21, %v380_v49 }
  0xa3   : > { %v1049_v51 = vpop.eup %1048  ;;  %v441_v26 = vmul.f32 %v1507_v44, %v440_v62  ;;  %v381_v29 = vmul.f32 %v1443_v34, %v1786_v11  ;;  %v451_v60 = vand.u32 2147483647, %v1520_v50  ;;  %vm1656_vm14 = vcmp.lt.f32.partialorder %v442_v7, 0.0004427343  ;;  %v655_v11 = vld [vmem:[#allocation6] sm:$0x3] }
  0xa4   : > { %v563_v23 = vadd.f32 %v555_v12, %v467_v53  ;;  %v458_v33 = vadd.f32 1.0, %v457_v32  ;;  %v374_v13 = vmax.f32 %v1789_v63, 0.0  ;;  %v382_v19 = vmul.f32 %v1451_v40, %v1789_v63  ;;  %v684_v63 = vld [vmem:[#allocation2] sm:$0xff] (!%p924_p11) }
  0xa5   : > { %v460_v44 = vand.u32 2147483647, %v1542_v56  ;;  %v640_v5 = vmul.f32 %v1049_v51, %v628_v37  ;;  %v450_v30 = vmul.f32 %v1520_v50, %v449_v39  ;;  %v389_v2 = vsub.f32 %v373_v52, %v381_v29  ;;  %v687_v29 = vld [vmem:[#allocation2 + $0x18] sm:$0xff] (!%p924_p11) }
  0xa6   : > { %571 = vst [vmem:[#allocation5 + $0x20] sm:$0xff] %v563_v23  ;;  %vm452_vm15 = vcmp.lt.f32.partialorder %v451_v60, 0.0004427343  ;;  %v459_v35 = vmul.f32 %v1542_v56, %v458_v33  ;;  %v390_v9 = vsub.f32 %v374_v13, %v382_v19  ;;  %v1201_v41 = vmov 1966171168   ;;  %v688_v23 = vld [vmem:[#allocation2 + $0x20] sm:$0xff] (!%p924_p11) }
  0xa7   : > { %v1051_v55 = vpop.eup %1050  ;;  %vm461_vm0 = vcmp.lt.f32.partialorder %v460_v44, 0.0004427343  ;;  %v660_v18 = vunpack.c.l.s4 %v1201_v41  ;;  %v662_v21 = vlaneseq  ;;  %v685_v13 = vld [vmem:[#allocation2 + $0x8] sm:$0xff] (!%p924_p11)  ;;  %v698_v19 = vadd.f32 (!%p924_p11), %v689_v4, %v688_v23 }
  0xa8   : > { %v1053_v54 = vpop.eup %1052  ;;  %v632_v61 = vmul.f32 %v1051_v55, %v619_v59  ;;  %vm704_vm3 = vcmask (!%p924_p11), 7168   ;;  %vm729_vm4 = vcmask (!%p924_p11), 15368   ;;  %vm754_vm5 = vcmask (!%p924_p11), 23568  }
  0xa9   : > { %v438_v27 = vmul.f32 0.6931472, %v1053_v54  ;;  %v661_v62 = vunpack.c.0.s8 %v660_v18  ;;  %v663_v7 = vshrl.u32 %v662_v21, 7  ;;  %vm677_vm1 = vcmp.lt.s32.totalorder %v662_v21, 256  ;;  %v761_v21 = vld [vmem:[#allocation5 + $0x10] sm:$0xff] (!%p924_p11) }
  0xaa   : > { %v1055_v0 = vpop.eup %1054  ;;  %v645_v34 = vmul.f32 4.0, %v632_v61  ;;  %v641_v20 = vmul.f32 5.0, %v632_v61  ;;  %vm779_vm6 = vcmask (!%p924_p11), 31768  }
  0xab   : > { %v1057_v24 = vpop.eup %1056  ;;  %v634_v42 = vmul.f32 %v1055_v0, %v628_v37  ;;  %v444_v1 = vsel %vm1656_vm14, %v441_v26, %v438_v27  ;;  %v664_v51 = vsub.s32 %v661_v62, %v663_v7  ;;  %v686_v26 = vld [vmem:[#allocation2 + $0x10] sm:$0xff] (!%p924_p11)  ;;  %v709_v0 = vld [vmem:[#allocation3] sm:$0xff] (!%p924_p11) }
  0xac   : > { %v647_v22 = vadd.f32 %v645_v34, %v1649_v3  ;;  %v468_v17 = vadd.f32 %v444_v1, %v388_v15  ;;  %v447_v40 = vmul.f32 0.6931472, %v1057_v24  ;;  %v1059_v28 = vpop.eup %1058  ;;  %v643_v48 = vmul.f32 %v641_v20, %v1649_v3  ;;  %v710_v34 = vld [vmem:[#allocation3 + $0x8] sm:$0xff] (!%p924_p11)  ;;  %v691_v24 = vld [vmem:[#allocation2 + $0x38] sm:$0xff] (!%p924_p11)  ;;  %v713_v1 = vld [vmem:[#allocation3 + $0x20] sm:$0xff] (!%p924_p11) }
  0xad   : > { %v646_v31 = vmul.f32 4.0, %v634_v42  ;;  %v456_v38 = vmul.f32 0.6931472, %v1059_v28  ;;  %v642_v47 = vmul.f32 5.0, %v634_v42  ;;  %v788_v3 = vsub.s32 (!%p924_p11), 0, %v663_v7  ;;  %v735_v28 = vld [vmem:[#allocation4 + $0x8] sm:$0xff] (!%p924_p11) }
  0xae   : > { %v649_v57 = vadd.f32 1e-06, %v647_v22  ;;  %v564_v50 = vadd.f32 %v556_v6, %v468_v17  ;;  %v453_v16 = vsel %vm452_vm15, %v450_v30, %v447_v40  ;;  %v792_v15 = vsub.s32 (!%p924_p11), 1, %v663_v7  ;;  %v690_v30 = vld [vmem:[#allocation2 + $0x30] sm:$0xff] (!%p924_p11)  ;;  %v714_v6 = vld [vmem:[#allocation3 + $0x28] sm:$0xff] (!%p924_p11)  ;;  %v712_v17 = vld [vmem:[#allocation3 + $0x18] sm:$0xff] (!%p924_p11) }
  0xaf   : > { %v648_v10 = vadd.f32 %v646_v31, %v640_v5  ;;  %v469_v43 = vadd.f32 %v453_v16, %v389_v2  ;;  %v462_v46 = vsel %vm461_vm0, %v459_v35, %v456_v38  ;;  %v644_v49 = vmul.f32 %v642_v47, %v640_v5  ;;  %v711_v22 = vld [vmem:[#allocation3 + $0x10] sm:$0xff] (!%p924_p11)  ;;  %v734_v35 = vld [vmem:[#allocation4] sm:$0xff] (!%p924_p11) }
  0xb0   : > { %1060 = vrcp.f32 %v649_v57  ;;  %572 = vst [vmem:[#allocation5 + $0x28] sm:$0xff] %v564_v50  ;;  %v470_v59 = vadd.f32 %v462_v46, %v390_v9  ;;  %v695_v61 = vadd.f32 (!%p924_p11), %v687_v29, %v686_v26  ;;  %v692_v5 = vadd.f32 (!%p924_p11), %v685_v13, %v684_v63  ;;  %v715_v9 = vld [vmem:[#allocation3 + $0x30] sm:$0xff] (!%p924_p11)  ;;  %v716_v57 = vld [vmem:[#allocation3 + $0x38] sm:$0xff] (!%p924_p11)  ;;  %v738_v16 = vld [vmem:[#allocation4 + $0x20] sm:$0xff] (!%p924_p11) }
  0xb1   : > { %v650_v36 = vadd.f32 1e-06, %v648_v10  ;;  %v565_v25 = vadd.f32 %v557_v58, %v469_v43  ;;  %v717_v42 = vadd.f32 (!%p924_p11), %v710_v34, %v709_v0  ;;  %v701_v2 = vadd.f32 (!%p924_p11), %v691_v24, %v690_v30  ;;  %v739_v58 = vld [vmem:[#allocation4 + $0x28] sm:$0xff] (!%p924_p11)  ;;  %v736_v10 = vld [vmem:[#allocation4 + $0x10] sm:$0xff] (!%p924_p11)  ;;  %v737_v43 = vld [vmem:[#allocation4 + $0x18] sm:$0xff] (!%p924_p11) }
  0xb2   : > { %v566_v56 = vadd.f32 %v558_v14, %v470_v59  ;;  %696 = vadd.xlane.f32.xlu1 (!%p924_p11), %v695_v61  ;;  %v723_v40 = vadd.f32 (!%p924_p11), %v714_v6, %v713_v1  ;;  %v720_v31 = vadd.f32 (!%p924_p11), %v712_v17, %v711_v22  ;;  %v742_v50 = vadd.f32 (!%p924_p11), %v735_v28, %v734_v35  ;;  %v759_v14 = vld [vmem:[#allocation5] sm:$0xff] (!%p924_p11)  ;;  %v740_v59 = vld [vmem:[#allocation4 + $0x30] sm:$0xff] (!%p924_p11) }
  0xb3   : > { %1062 = vrcp.f32 %v650_v36  ;;  %573 = vst [vmem:[#allocation5 + $0x30] sm:$0xff] %v565_v25  ;;  %v726_v38 = vadd.f32 (!%p924_p11), %v716_v57, %v715_v9  ;;  %v748_v46 = vadd.f32 (!%p924_p11), %v739_v58, %v738_v16  ;;  %v760_v36 = vld [vmem:[#allocation5 + $0x8] sm:$0xff] (!%p924_p11)  ;;  %v745_v25 = vadd.f32 (!%p924_p11), %v737_v43, %v736_v10  ;;  %v763_v47 = vld [vmem:[#allocation5 + $0x20] sm:$0xff] (!%p924_p11) }
  0xb4   : > { %574 = vst [vmem:[#allocation5 + $0x38] sm:$0xff] %v566_v56  ;;  %v741_v56 = vld [vmem:[#allocation4 + $0x38] sm:$0xff] (!%p924_p11)  ;;  %v767_v20 = vadd.f32 (!%p924_p11), %v760_v36, %v759_v14 }
  0xb5   : > { %v751_v18 = vadd.f32 (!%p924_p11), %v741_v56, %v740_v59 }
  0xb6   : > { %699 = vadd.xlane.f32.xlu1 (!%p924_p11), %v698_v19 }
  0xb7   : > { %v764_v41 = vld [vmem:[#allocation5 + $0x28] sm:$0xff] (!%p924_p11) }
  0xba   : > { %v1061_v45 = vpop.eup %1060  ;;  %718 = vadd.xlane.f32.xlu1 (!%p924_p11), %v717_v42  ;;  %v765_v62 = vld [vmem:[#allocation5 + $0x30] sm:$0xff] (!%p924_p11) }
  0xbb   : > { %v652_v32 = vmul.f32 %v1061_v45, %v643_v48  ;;  %v762_v48 = vld [vmem:[#allocation5 + $0x18] sm:$0xff] (!%p924_p11)  ;;  %v773_v45 = vadd.f32 (!%p924_p11), %v764_v41, %v763_v47 }
  0xbc   : > { %v766_v7 = vld [vmem:[#allocation5 + $0x38] sm:$0xff] (!%p924_p11) }
  0xbd   : > { %v1063_v8 = vpop.eup %1062 }
  0xbe   : > { %v654_v12 = vmul.f32 %v1063_v8, %v644_v49  ;;  %724 = vadd.xlane.f32.xlu1 (!%p924_p11), %v723_v40  ;;  %v770_v49 = vadd.f32 (!%p924_p11), %v762_v48, %v761_v21 }
  0xc0   : > { %v658_v37 = vcombine.low %v652_v32, %v654_v12  ;;  %v776_v32 = vadd.f32 (!%p924_p11), %v766_v7, %v765_v62 }
  0xc2   : > { %v665_v53 = vrot.slane %v658_v37, %v664_v51  ;;  %683 = sbr.rel (%p924_p11) target bundleno = 418 (0x1a2), region = 44  ;;  %743 = vadd.xlane.f32.xlu1 (!%p924_p11), %v742_v50 }
  0xc4   : > { %v672_v52 = vrot.slane %v665_v53, %v664_v51 }
  0xc6   : > { %v674_v39 = vadd.f32 %v672_v52, %v655_v11  ;;  %749 = vadd.xlane.f32.xlu1 (!%p924_p11), %v748_v46 }
  0xc8   : > { %679 = vst.msk [vmem:[#allocation6] sm:$0x3] %vm677_vm1, %v674_v39 }
  0xca   : > { %768 = vadd.xlane.f32.xlu1 %v767_v20 }
  0xce   : > { %774 = vadd.xlane.f32.xlu1 %v773_v45 }
  0xcf   : > { %v784_v55 = vld [vmem:[#allocation6] sm:$0x3] }
  0xd0   : > { %v789_v60 = vrot.slane %v784_v55, %v788_v3  ;;  %v793_v54 = vrot.slane %v784_v55, %v792_v15 }
  0xd2   : > { %v797_v33 = vsel %vm796_vm2, %v789_v60, 0.0  ;;  %v798_v27 = vsel %vm796_vm2, %v793_v54, 0.0 }
  0xd3   : > { %v799_v44 = vadd.f32 %v798_v27, %v797_v33 }
  0xd5   : > { %800 = vadd.xlane.f32.xlu0 %v799_v44 }
  0xd9   : > { %693 = vadd.xlane.f32.xlu0 %v692_v5 }
  0xdd   : > { %702 = vadd.xlane.f32.xlu0 %v701_v2 }
  0xe1   : > { %721 = vadd.xlane.f32.xlu0 %v720_v31 }
  0xe5   : > { %727 = vadd.xlane.f32.xlu0 %v726_v38 }
  0xe9   : > { %746 = vadd.xlane.f32.xlu0 %v745_v25 }
  0xed   : > { %752 = vadd.xlane.f32.xlu0 %v751_v18 }
  0xf1   : > { %771 = vadd.xlane.f32.xlu0 %v770_v49 }
  0xf5   : > { %777 = vadd.xlane.f32.xlu0 %v776_v32 }
 0x13f   : > { %v697_v8 = vpop.xlane.xlu1 %696 }
 0x140   : > { %706 = vst.msk [vmem:[%s1765_s2 + $0x8] sm:$0xff] %vm704_vm3, %v697_v8 }
 0x143   : > { %v700_v37 = vpop.xlane.xlu1 %699 }
 0x144   : > { %707 = vst.msk [vmem:[%s1765_s2 + $0x10] sm:$0xff] %vm704_vm3, %v700_v37 }
 0x147   : > { %v719_v39 = vpop.xlane.xlu1 %718 }
 0x14b   : > { %v725_v26 = vpop.xlane.xlu1 %724 }
 0x14c   : > { %732 = vst.msk [vmem:[%s1765_s2 + $0x10] sm:$0xff] %vm729_vm4, %v725_v26 }
 0x14f   : > { %v744_v54 = vpop.xlane.xlu1 %743 }
 0x153   : > { %v750_v23 = vpop.xlane.xlu1 %749 }
 0x154   : > { %757 = vst.msk [vmem:[%s1765_s2 + $0x10] sm:$0xff] %vm754_vm5, %v750_v23 }
 0x157   : > { %v769_v33 = vpop.xlane.xlu1 %768 }
 0x15b   : > { %v775_v63 = vpop.xlane.xlu1 %774 }
 0x15c   : > { %782 = vst.msk [vmem:[%s1765_s2 + $0x10] sm:$0xff] %vm779_vm6, %v775_v63 }
 0x162   : > { %v801_v12 = vpop.xlane.xlu0 %800 }
 0x163   : > { %v802_v51 = vrot.slane %v801_v12, 4 }
 0x165   : > { %v803_v53 = vadd.f32 %v802_v51, %v801_v12 }
 0x166   : > { %v694_v11 = vpop.xlane.xlu0 %693 }
 0x167   : > { %v804_v52 = vrot.slane %v803_v53, 2  ;;  %705 = vst.msk [vmem:[%s1765_s2] sm:$0xff] %vm704_vm3, %v694_v11 }
 0x168   : > { %730 = vst.msk [vmem:[%s1765_s2] sm:$0xff] %vm729_vm4, %v719_v39 }
 0x169   : > { %v805_v55 = vadd.f32 %v804_v52, %v803_v53  ;;  %755 = vst.msk [vmem:[%s1765_s2] sm:$0xff] %vm754_vm5, %v744_v54 }
 0x16a   : > { %v703_v3 = vpop.xlane.xlu0 %702  ;;  %780 = vst.msk [vmem:[%s1765_s2] sm:$0xff] %vm779_vm6, %v769_v33 }
 0x16b   : > { %v806_v15 = vrot.slane %v805_v55, 1  ;;  %708 = vst.msk [vmem:[%s1765_s2 + $0x18] sm:$0xff] %vm704_vm3, %v703_v3 }
 0x16d   : > { %v807_v29 = vadd.f32 %v806_v15, %v805_v55 }
 0x16e   : > { %v722_v60 = vpop.xlane.xlu0 %721 }
 0x16f   : > { %931 = vpush %v807_v29 }
 0x170   : > { %731 = vst.msk [vmem:[%s1765_s2 + $0x8] sm:$0xff] %vm729_vm4, %v722_v60 }
 0x172   : > { %v728_v61 = vpop.xlane.xlu0 %727 }
 0x173   : > { %733 = vst.msk [vmem:[%s1765_s2 + $0x18] sm:$0xff] %vm729_vm4, %v728_v61 }
 0x176   : > { %v747_v4 = vpop.xlane.xlu0 %746 }
 0x177   : > { %756 = vst.msk [vmem:[%s1765_s2 + $0x8] sm:$0xff] %vm754_vm5, %v747_v4 }
 0x17a   : > { %v753_v27 = vpop.xlane.xlu0 %752 }
 0x17b   : > { %758 = vst.msk [vmem:[%s1765_s2 + $0x18] sm:$0xff] %vm754_vm5, %v753_v27 }
 0x17e   : > { %v772_v13 = vpop.xlane.xlu0 %771 }
 0x17f   : > { %781 = vst.msk [vmem:[%s1765_s2 + $0x8] sm:$0xff] %vm779_vm6, %v772_v13 }
 0x182   : > { %v778_v19 = vpop.xlane.xlu0 %777 }
 0x183   : > { %783 = vst.msk [vmem:[%s1765_s2 + $0x18] sm:$0xff] %vm779_vm6, %v778_v19 }
 0x1a0   : > { %s932_s11 = spop %931 }
 0x1a1   : > { %810 = sst [smem:[#allocation12]] %s932_s11 }
 0x1a2 PF: > { %p949_p4 = scmp.eq.s32.totalorder %s911_s18, 1  ;;  %s1124_s7 = scalar_lea.hbm %s1766_s3, 16 }
 0x1a3   : > { %p1125_p8 = scmp.ne.s32.totalorder %s1766_s3, %s1124_s7  ;;  %p1130_p13 = scmp.lt.u32.totalorder %s1124_s7, %s1766_s3 }
 0x1a5   : > { %p1126_p1 = pnand %p1125_p8, %p949_p4 }
 0x1a7   : > { %p1127_p2 = pneg %p1126_p1 }
 0x1a9   : > { %p1132_p3 = pnand %p1130_p13, %p1127_p2 }
 0x1ab   : > { %1135 = shalt.err (!%p1132_p3)
}
 0x1ac   : > { %s1202_s15 = smov [#allocation12]  }
 0x1ad   : > { %938 = dma.smem_to_hbm (%p949_p4), %s1202_s15, 16, %s1766_s3, [#allocation9]  }
 0x1ae   : > { %1169 = dma.done.wait (%p949_p4), [#allocation9], 16  }
 0x1af   : > { %1171 = vsyncadd (%p949_p4), [#allocation9], 4294967280 }
 0x1b0   : > { %830 = sfence }
 0x1b1 PF: > { %s21_s17 = sadd.s32 1, %s1194_s17   ;;  %s1790_s12 = smov %s1178_s13 }
 0x1b2   : > { %p18_p5 = scmp.ge.s32.totalorder %s21_s17, 4   ;;  %s1791_s13 = smov %s1182_s14 }
 0x1b3   : > { %s1792_s14 = smov %s1274_s24  ;;  %s1793_s15 = smov %s1190_s16 }
 0x1b4   : > { %s1794_s16 = smov %s1796_s19  ;;  %20 = sbr.rel (!%p18_p5) target bundleno = 7 (0x7), region = 95 }
 0x1bb   :  { %836 = vsyncpa [#allocation8], 1 }
 0x1bc   :  { %838 = vsyncpa [#allocation8 + $0x1], 1 }
 0x1bd   :  { %839 = vsyncpa [#allocation11], 1 }
 0x1be   :  { %841 = vsyncpa [#allocation11 + $0x1], 1 }
 0x1bf   :  { %842 = vsyncpa [#allocation9], 1 }
 0x1c0   :  { %844 = vsyncpa [#allocation9 + $0x1], 1 }

</bundles_post_ra>
